<compile_context>
chip_gen: v7x
topology: tpu7x:2x2x1
jax: 0.10.0
libtpu: 0.0.40
codegen_flags: <defaults>
</compile_context>

<pallas_src>
import jax
import jax.numpy as jnp
from jax.experimental import pallas as pl
from jax.experimental.pallas import tpu as pltpu


# The collapse above is tied to this exact einsum in the module definition.
_VALUE_EINSUM = "bhqk,bhvd->bhqd"


def _mhca_kernel(w_ref, b_ref, x3_ref, x4_ref, o_ref):
    """o[b] = w_eff @ x3[b] + b_eff + x4[b], one HW lane-block per grid step.

    w_ref:  (C, C)        effective 1x1-conv weight (wo_head @ wv_head)
    b_ref:  (C, 1)        effective bias
    x3/x4/o: (B, C, hw_blk)
    """
    w = w_ref[...]
    bias = b_ref[...]
    for b in range(x3_ref.shape[0]):          # static unroll over (small) batch
        y = jnp.dot(w, x3_ref[b], preferred_element_type=jnp.float32)
        o_ref[b] = (y + bias + x4_ref[b]).astype(o_ref.dtype)


def _round_up(x, m):
    return (x + m - 1) // m * m


def _pick_hw_block(hw_pad, per_lane_bytes):
    """Largest lane block (multiple of 128) whose double-buffered working set
    stays comfortably under the scoped-VMEM default on every TPU generation."""
    try:
        info = pltpu.get_tpu_info()
        vmem = getattr(info, "vmem_capacity_bytes", None) or 64 * 1024 * 1024
    except Exception:  # pragma: no cover - AOT / mock / non-TPU fallback
        vmem = 64 * 1024 * 1024               # v7x physical VMEM (smallest)
    budget = vmem // 8                        # well under 16/32 MiB scoped defaults
    cap = max(128, (budget // per_lane_bytes) // 128 * 128)
    if hw_pad <= cap:
        return hw_pad                         # single wide grid step (common case)
    blk = cap
    while blk > 128 and hw_pad % blk != 0:    # hw_pad is a multiple of 128,
        blk -= 128                            # so blk=128 always divides
    return blk


def fold_mhca_params(params, *, heads):
    """Host-side fold: value-conv -> degenerate attention -> output-conv.

    Run ONCE per parameter set (keep it off the per-call path); the kernel
    consumes only (w_eff, b_eff).  Valid because the module's value einsum is
    'bhqk,bhvd->bhqd' (see header note).
    """
    RD, C = params["wv"].shape
    dph = RD // heads
    wv_h = params["wv"].reshape(heads, dph, C).sum(axis=1)   # (heads, C)
    bv_h = params["bv"].reshape(heads, dph, 1).sum(axis=1)   # (heads, 1)
    wo_h = params["wo"].reshape(C, heads, dph).sum(axis=2)   # (C, heads)
    w_eff = wo_h @ wv_h                                      # (C, C)
    b_eff = wo_h @ bv_h + params["bo"]                       # (C, 1)
    return w_eff, b_eff


def mhca_apply(x3, x4, w_eff, b_eff):
    """Kernel entry: y = w_eff @ x3 + b_eff + x4 over (B, C, H, W)."""
    B, C, H, W = x3.shape
    HW = H * W
    hw_pad = _round_up(max(HW, 128), 128)     # keep output stores lane-dense

    x3f = x3.reshape(B, C, HW)
    x4f = x4.reshape(B, C, HW)
    if hw_pad != HW:
        pad = ((0, 0), (0, 0), (0, hw_pad - HW))
        x3f = jnp.pad(x3f, pad)
        x4f = jnp.pad(x4f, pad)

    # VMEM sizing: 3 activation slabs (x3, x4, out), double-buffered,
    # C padded up to 8 sublanes, f32.
    per_lane = 3 * 2 * B * _round_up(C, 8) * 4
    hw_blk = _pick_hw_block(hw_pad, per_lane)
    grid_n = hw_pad // hw_blk

    # NOTE: for very large HW on v7x a CORE_PARALLEL leading axis could engage
    # both TensorCores; at these sizes a single wide step is strictly faster.
    act_spec = pl.BlockSpec((B, C, hw_blk), lambda i: (0, 0, i))
    out = pl.pallas_call(
        _mhca_kernel,
        out_shape=jax.ShapeDtypeStruct((B, C, hw_pad), x3.dtype),
        grid=(grid_n,),
        in_specs=[
            pl.BlockSpec((C, C), lambda i: (0, 0)),   # w_eff (block-resident)
            pl.BlockSpec((C, 1), lambda i: (0, 0)),   # b_eff (block-resident)
            act_spec,                                  # x3
            act_spec,                                  # x4 residual
        ],
        out_specs=act_spec,
        compiler_params=pltpu.CompilerParams(
            dimension_semantics=("parallel",)),
    )(w_eff, b_eff, x3f, x4f)

    if hw_pad != HW:
        out = out[..., :HW]
    return out.reshape(B, C, H, W)


def multi_head_cross_attention(x1, x2, x3, x4, params, *, heads):
    """Interface-parity wrapper.  x1/x2 are accepted for parity with the
    PyTorch module but never influence its output (see header), so they are
    not read.  Prefer fold_mhca_params() once + mhca_apply() per step."""
    del x1, x2
    w_eff, b_eff = fold_mhca_params(params, heads=heads)
    return mhca_apply(x3, x4, w_eff, b_eff)


def _reference(x1, x2, x3, x4, params, *, heads):
    """Pure-JAX transcription of the PyTorch forward (full q/k/softmax path)."""
    B, C, H, W = x1.shape
    RD = params["wq"].shape[0]
    dph = RD // heads

    def conv1x1(x, w, b):  # x (B,C,H,W), w (O,C), b (O,1)
        return jnp.einsum("oc,bchw->bohw", w, x) + b[:, 0][None, :, None, None]

    q = conv1x1(x1, params["wq"], params["bq"]).reshape(B, heads, dph, H * W)
    k = conv1x1(x2, params["wk"], params["bk"]).reshape(B, heads, dph, H * W)
    v = conv1x1(x3, params["wv"], params["bv"]).reshape(B, heads, dph, H * W)
    qk = jnp.einsum("bhqd,bhkd->bhqk", q, k) / (dph ** 0.5)
    attn = jax.nn.softmax(qk, axis=-1)
    v = jnp.einsum(_VALUE_EINSUM, attn, v)
    v = v.reshape(B, RD, H, W)
    return conv1x1(v, params["wo"], params["bo"]) + x4


if __name__ == "__main__":
    # Small shapes consistent with the module.
    B, C, H, W = 2, 4, 16, 16
    reduced_dim, heads = 16, 2

    key = jax.random.PRNGKey(0)
    ks = jax.random.split(key, 12)

    def winit(k, shape, fan_in):
        bound = 1.0 / (fan_in ** 0.5)
        return jax.random.uniform(k, shape, jnp.float32, -bound, bound)

    # Conv2d(channels, reduced_dim, 1) weights (O, C, 1, 1) flattened to (O, C).
    params = {
        "wq": winit(ks[0], (reduced_dim, C), C), "bq": winit(ks[1], (reduced_dim, 1), C),
        "wk": winit(ks[2], (reduced_dim, C), C), "bk": winit(ks[3], (reduced_dim, 1), C),
        "wv": winit(ks[4], (reduced_dim, C), C), "bv": winit(ks[5], (reduced_dim, 1), C),
        "wo": winit(ks[6], (C, reduced_dim), reduced_dim),
        "bo": winit(ks[7], (C, 1), reduced_dim),
    }

    x1 = jax.random.normal(ks[8], (B, C, H, W), jnp.float32)
    x2 = jax.random.normal(ks[9], (B, C, H, W), jnp.float32)
    x3 = jax.random.normal(ks[10], (B, C, H, W), jnp.float32)
    x4 = jax.random.normal(ks[11], (B, C, H, W), jnp.float32)

    # Fold the conv weights once (off the per-call path), jit only the kernel.
    w_eff, b_eff = jax.block_until_ready(fold_mhca_params(params, heads=heads))
    apply_fn = jax.jit(mhca_apply)

    out = jax.block_until_ready(apply_fn(x3, x4, w_eff, b_eff))

    ref = _reference(x1, x2, x3, x4, params, heads=heads)
    assert out.shape == (B, C, H, W)
    # 1e-4 tolerance: softmax rows sum to 1 only up to ~1e-7 float rounding,
    # which is the only difference between the collapsed and full paths.
    assert jnp.allclose(out, ref, atol=1e-4, rtol=1e-4), "mismatch vs reference"

    print("KERNEL_OK")
</pallas_src>

<mosaic_0001>
module attributes {stable_mosaic.version = 11 : i64} {
  func.func @_mhca_kernel(%arg0: i32, %arg1: memref<4x4xf32, #tpu.memory_space<vmem>>, %arg2: memref<4x1xf32, #tpu.memory_space<vmem>>, %arg3: memref<2x4x256xf32, #tpu.memory_space<vmem>>, %arg4: memref<2x4x256xf32, #tpu.memory_space<vmem>>, %arg5: memref<2x4x256xf32, #tpu.memory_space<vmem>>) attributes {dimension_semantics = [#tpu.dimension_semantics<parallel>], iteration_bounds = array<i64: 1>, scalar_prefetch = 0 : i64, scratch_operands = 0 : i64, tpu.core_type = #tpu.core_type<tc>, window_params = [{pipeline_mode = #tpu.pipeline_mode<synchronous>, transform_indices = @transform_0, window_bounds = array<i64: 4, 4>}, {pipeline_mode = #tpu.pipeline_mode<synchronous>, transform_indices = @transform_1, window_bounds = array<i64: 4, 1>}, {transform_indices = @transform_2, window_bounds = array<i64: 2, 4, 256>}, {transform_indices = @transform_3, window_bounds = array<i64: 2, 4, 256>}, {transform_indices = @transform_4, window_bounds = array<i64: 2, 4, 256>}]} {
    %c0 = arith.constant 0 : index
    %c0_0 = arith.constant 0 : index
    %0 = vector.load %arg1[%c0, %c0_0] : memref<4x4xf32, #tpu.memory_space<vmem>>, vector<4x4xf32>
    %c0_1 = arith.constant 0 : index
    %c0_2 = arith.constant 0 : index
    %1 = vector.load %arg2[%c0_1, %c0_2] : memref<4x1xf32, #tpu.memory_space<vmem>>, vector<4x1xf32>
    %c0_3 = arith.constant 0 : index
    %c0_4 = arith.constant 0 : index
    %c0_5 = arith.constant 0 : index
    %2 = vector.load %arg3[%c0_3, %c0_4, %c0_5] : memref<2x4x256xf32, #tpu.memory_space<vmem>>, vector<1x4x256xf32>
    %3 = vector.shape_cast %2 : vector<1x4x256xf32> to vector<4x256xf32>
    %cst = arith.constant dense<0.000000e+00> : vector<4x256xf32>
    %4 = tpu.matmul %0, %3, %cst {dimension_numbers = #tpu.dot_dimension_numbers<[1], [0], [0], [1], [0, 0, 1, 1], [], []>} : vector<4x4xf32>, vector<4x256xf32>, vector<4x256xf32> -> vector<4x256xf32>
    %5 = vector.broadcast %1 : vector<4x1xf32> to vector<4x256xf32>
    %6 = arith.addf %4, %5 : vector<4x256xf32>
    %c0_6 = arith.constant 0 : index
    %c0_7 = arith.constant 0 : index
    %c0_8 = arith.constant 0 : index
    %7 = vector.load %arg4[%c0_6, %c0_7, %c0_8] : memref<2x4x256xf32, #tpu.memory_space<vmem>>, vector<1x4x256xf32>
    %8 = vector.shape_cast %7 : vector<1x4x256xf32> to vector<4x256xf32>
    %9 = arith.addf %6, %8 : vector<4x256xf32>
    %c0_9 = arith.constant 0 : index
    %c0_10 = arith.constant 0 : index
    %c0_11 = arith.constant 0 : index
    %10 = vector.load %arg5[%c0_9, %c0_10, %c0_11] : memref<2x4x256xf32, #tpu.memory_space<vmem>>, vector<1x4x256xf32>
    %11 = vector.shape_cast %10 : vector<1x4x256xf32> to vector<4x256xf32>
    %12 = vector.shape_cast %9 : vector<4x256xf32> to vector<1x4x256xf32>
    tpu.vector_store %arg5[%c0_9, %c0_10, %c0_11], %12 {strides = array<i32>} : memref<2x4x256xf32, #tpu.memory_space<vmem>>, vector<1x4x256xf32>,
    %c1 = arith.constant 1 : index
    %c0_12 = arith.constant 0 : index
    %c0_13 = arith.constant 0 : index
    %13 = vector.load %arg3[%c1, %c0_12, %c0_13] : memref<2x4x256xf32, #tpu.memory_space<vmem>>, vector<1x4x256xf32>
    %14 = vector.shape_cast %13 : vector<1x4x256xf32> to vector<4x256xf32>
    %cst_14 = arith.constant dense<0.000000e+00> : vector<4x256xf32>
    %15 = tpu.matmul %0, %14, %cst_14 {dimension_numbers = #tpu.dot_dimension_numbers<[1], [0], [0], [1], [0, 0, 1, 1], [], []>} : vector<4x4xf32>, vector<4x256xf32>, vector<4x256xf32> -> vector<4x256xf32>
    %16 = vector.broadcast %1 : vector<4x1xf32> to vector<4x256xf32>
    %17 = arith.addf %15, %16 : vector<4x256xf32>
    %c1_15 = arith.constant 1 : index
    %c0_16 = arith.constant 0 : index
    %c0_17 = arith.constant 0 : index
    %18 = vector.load %arg4[%c1_15, %c0_16, %c0_17] : memref<2x4x256xf32, #tpu.memory_space<vmem>>, vector<1x4x256xf32>
    %19 = vector.shape_cast %18 : vector<1x4x256xf32> to vector<4x256xf32>
    %20 = arith.addf %17, %19 : vector<4x256xf32>
    %c1_18 = arith.constant 1 : index
    %c0_19 = arith.constant 0 : index
    %c0_20 = arith.constant 0 : index
    %21 = vector.load %arg5[%c1_18, %c0_19, %c0_20] : memref<2x4x256xf32, #tpu.memory_space<vmem>>, vector<1x4x256xf32>
    %22 = vector.shape_cast %21 : vector<1x4x256xf32> to vector<4x256xf32>
    %23 = vector.shape_cast %20 : vector<4x256xf32> to vector<1x4x256xf32>
    tpu.vector_store %arg5[%c1_18, %c0_19, %c0_20], %23 {strides = array<i32>} : memref<2x4x256xf32, #tpu.memory_space<vmem>>, vector<1x4x256xf32>,
    return
  }
  func.func @transform_0(%arg0: i32) -> (i32, i32) {
    %c0_i32 = arith.constant 0 : i32
    %c0_i32_0 = arith.constant 0 : i32
    %c0_i32_1 = arith.constant 0 : i32
    return %c0_i32, %c0_i32_0 : i32, i32
  }
  func.func @transform_1(%arg0: i32) -> (i32, i32) {
    %c0_i32 = arith.constant 0 : i32
    %c0_i32_0 = arith.constant 0 : i32
    %c0_i32_1 = arith.constant 0 : i32
    return %c0_i32, %c0_i32_0 : i32, i32
  }
  func.func @transform_2(%arg0: i32) -> (i32, i32, i32) {
    %c0_i32 = arith.constant 0 : i32
    %c0_i32_0 = arith.constant 0 : i32
    %c0_i32_1 = arith.constant 0 : i32
    return %c0_i32, %c0_i32_0, %arg0 : i32, i32, i32
  }
  func.func @transform_3(%arg0: i32) -> (i32, i32, i32) {
    %c0_i32 = arith.constant 0 : i32
    %c0_i32_0 = arith.constant 0 : i32
    %c0_i32_1 = arith.constant 0 : i32
    return %c0_i32, %c0_i32_0, %arg0 : i32, i32, i32
  }
  func.func @transform_4(%arg0: i32) -> (i32, i32, i32) {
    %c0_i32 = arith.constant 0 : i32
    %c0_i32_0 = arith.constant 0 : i32
    %c0_i32_1 = arith.constant 0 : i32
    return %c0_i32, %c0_i32_0, %arg0 : i32, i32, i32
  }
}

</mosaic_0001>

<bundles_post_ra>
// kernel: mhca_apply.1
= control target key start
LH: loop header
LB: loop body
LE: loop exit
PB: predicated region body
PF: predicated region fallthrough
CT: control target
= control target key end

     0   :  { %vm31_vm0 = vcmask 1043456   ;;  %v230_v2 = vmov 0.0   ;;  %v231_v5 = vmov 0   ;;  %vm27_vm1 = vcmask 31744   ;;  %s285_s2 = inlined_call_operand.vmem [shape: f32[2,4,256], index: 2, kind: input, shape index: {}]   ;;  %s286_s0 = inlined_call_operand.vmem [shape: f32[4,4], index: 0, kind: input, shape index: {}]   ;;  %s287_s1 = inlined_call_operand.vmem [shape: f32[4,1], index: 1, kind: input, shape index: {}]   ;;  %s288_s3 = inlined_call_operand.vmem [shape: f32[2,4,256], index: 3, kind: input, shape index: {}]   ;;  %s289_s4 = inlined_call_operand.vmem [shape: f32[2,4,256], index: 4, kind: output, shape index: {}]  }
   0x1   :  { %v19_v0 = vld [vmem:[%s285_s2] sm:$0xff]  ;;  %v217_v1 = vld [vmem:[%s285_s2 + $0x8] sm:$0xff]  ;;  %100 = vmatprep.mubr.f32.mxu0 %v230_v2  ;;  %190 = vmatprep.mubr.f32.mxu1 %v230_v2 }
   0x2   :  { %v26_v3 = vcombine.high %v19_v0, %v19_v0  ;;  %v121_v4 = vcombine.high %v217_v1, %v217_v1  ;;  %225 = vset.pattern.permute.xlu0 %v231_v5  ;;  %v18_v6 = vld [vmem:[%s287_s1] sm:$0xf]  ;;  %v221_v9 = vld [vmem:[%s288_s3 + $0x8] sm:$0xff] }
   0x3   :  { %v17_v7 = vld [vmem:[%s286_s0] sm:$0xf]  ;;  %22 = vperm.xlu0 %225, %v18_v6   ;;  %v200_v14 = vcombine.high %v221_v9, %v221_v9 }
   0x4   :  { %214 = vmatprep.subr.msk.mxu0 %vm31_vm0, %v26_v3  ;;  %218 = vmatprep.subr.msk.mxu1 %vm31_vm0, %v121_v4  ;;  %v107_v8 = vld [vmem:[%s288_s3] sm:$0xff] }
   0x5   :  { %215 = vmatpush1.msk.msra.mxu0 %vm31_vm0, %v19_v0  ;;  %219 = vmatpush1.msk.msra.mxu1 %vm31_vm0, %v217_v1  ;;  %v109_v13 = vcombine.high %v107_v8, %v107_v8 }
   0x6   :  { %216 = vmatmul.mubr.msk.f32.vlgmr.msra.gmra.mrb[0].mxu0 %vm27_vm1, %v17_v7  ;;  %220 = vmatmul.mubr.msk.f32.vlgmr.msra.gmra.mrb[0].mxu1 %vm27_vm1, %v17_v7 }
  0x82   :  { %v23_v10 = vpop.permute.xlu0 %22 }
  0xd9   :  { %v102_v11 = vpop.f32.mrb[0].mxu0  ;;  %v192_v12 = vpop.f32.mrb[0].mxu1 }
  0xda   :  { %v103_v15 = vadd.f32 %v102_v11, %v23_v10  ;;  %v193_v16 = vadd.f32 %v192_v12, %v23_v10  ;;  %v104_v17 = vpop.f32.mrb[1].mxu0  ;;  %v194_v18 = vpop.f32.mrb[1].mxu1 }
  0xdb   :  { %v105_v19 = vadd.f32 %v104_v17, %v23_v10  ;;  %v195_v20 = vadd.f32 %v194_v18, %v23_v10 }
  0xdc   :  { %v111_v21 = vadd.f32 %v107_v8, %v103_v15  ;;  %v202_v22 = vadd.f32 %v221_v9, %v193_v16 }
  0xdd   :  { %v112_v23 = vadd.f32 %v109_v13, %v105_v19  ;;  %v203_v24 = vadd.f32 %v200_v14, %v195_v20 }
  0xdf   :  { %v115_v25 = vcombine.low %v111_v21, %v112_v23  ;;  %v206_v26 = vcombine.low %v202_v22, %v203_v24 }
  0xe1   :  { %117 = vst [vmem:[%s289_s4] sm:$0xff] %v115_v25  ;;  %222 = vst [vmem:[%s289_s4 + $0x8] sm:$0xff] %v206_v26 }

</bundles_post_ra>
